<compile_context>
chip_gen: v7x
topology: tpu7x:2x2x1
jax: 0.10.0
libtpu: 0.0.40
codegen_flags: <defaults>
</compile_context>

<pallas_src>
import jax
import jax.numpy as jnp
from jax.experimental import pallas as pl
from jax.experimental.pallas import tpu as pltpu


def _round_up(x, m):
    return ((x + m - 1) // m) * m


def _qnet_kernel(x_ref, w1_ref, b1_ref, w2_ref, b2_ref, w3_ref, b3_ref,
                 qt_ref, act_ref):
    # Hidden layer 1: ReLU(x @ W1 + b1)   (bf16 MXU matmul, f32 accumulate)
    h1 = jnp.dot(x_ref[...], w1_ref[...], preferred_element_type=jnp.float32)
    h1 = jnp.maximum(h1 + b1_ref[...], 0.0).astype(jnp.bfloat16)
    # Hidden layer 2: ReLU(h1 @ W2 + b2)
    h2 = jnp.dot(h1, w2_ref[...], preferred_element_type=jnp.float32)
    h2 = jnp.maximum(h2 + b2_ref[...], 0.0).astype(jnp.bfloat16)
    # Output layer: Q = h2 @ W3 + b3 (no activation), shape (tile_b, n_a)
    q = jnp.dot(h2, w3_ref[...], preferred_element_type=jnp.float32) + b3_ref[...]

    # Lane-dense store: transpose the small q tile to (n_a, tile_b) so the
    # output vst uses all 128 lanes instead of n_a/128 masked lanes.
    q_t = q.T                                            # (n_a, tile_b), XLU
    qt_ref[...] = q_t.astype(qt_ref.dtype)

    # Fused greedy action: first index attaining the per-column max, computed
    # as an n_a-sublane reduction over the lane-dense tile (matches
    # torch.argmax / jnp.argmax first-index tie-breaking).
    q_max = jnp.max(q_t, axis=0, keepdims=True)          # (1, tile_b)
    sub = jax.lax.broadcasted_iota(jnp.int32, q_t.shape, dimension=0)
    cand = jnp.where(q_t == q_max, sub, jnp.int32(2**31 - 1))
    act_ref[...] = jnp.min(cand, axis=0, keepdims=True).astype(jnp.int32)


def qnetwork_forward(state, params, *, tile_b=512):
    """Fused MLP Q-network forward.

    state: [B, obs_dim] float32
    params: (w1, b1, w2, b2, w3, b3) float32, weights stored [in, out]
    returns: (q_values [B, n_a] float32, greedy_actions [B] int32)
    """
    w1, b1, w2, b2, w3, b3 = params
    B, obs_dim = state.shape
    h1 = w1.shape[1]
    h2 = w2.shape[1]
    n_a = w3.shape[1]

    # bf16 storage halves HBM traffic for the dominant streams (state, W);
    # accumulation stays f32 via preferred_element_type inside the kernel.
    state_q = state.astype(jnp.bfloat16)
    w1q, w2q, w3q = (w.astype(jnp.bfloat16) for w in (w1, w2, w3))

    # Tile selection:
    #  * tiny batches: one tile of round_up(B, 8) rows (sublane constraint),
    #    no padding up to a full 512-row tile.
    #  * large batches: a big tile (multiple of 256 -> v6e/v7x MXU M-tile and
    #    the 128-lane output-block divisibility constraint).  B > tile then
    #    guarantees >= 2 grid steps, so v7x can megacore-shard the batch axis.
    if B <= tile_b:
        tile = max(8, _round_up(B, 8))
    else:
        tile = _round_up(tile_b, 256)
    b_pad = _round_up(B, tile)
    if b_pad != B:
        state_q = jnp.pad(state_q, ((0, b_pad - B), (0, 0)))
    grid = (b_pad // tile,)

    # Weights/biases stay VMEM-resident: same block for every grid step.
    resident = lambda arr: pl.BlockSpec(arr.shape, lambda i: (0,) * arr.ndim)

    flops = 2 * b_pad * (obs_dim * h1 + h1 * h2 + h2 * n_a)
    bytes_accessed = (
        b_pad * obs_dim * 2                      # state, bf16
        + (w1.size + w2.size + w3.size) * 2      # weights, bf16
        + (b1.size + b2.size + b3.size) * 4      # biases, f32
        + b_pad * n_a * 4                        # Q out, f32
        + b_pad * 4                              # actions, int32
    )

    qt_pad, act_pad = pl.pallas_call(
        _qnet_kernel,
        out_shape=(
            jax.ShapeDtypeStruct((n_a, b_pad), jnp.float32),   # lane-dense Q^T
            jax.ShapeDtypeStruct((1, b_pad), jnp.int32),       # lane-dense actions
        ),
        grid=grid,
        in_specs=[
            pl.BlockSpec((tile, obs_dim), lambda i: (i, 0)),
            resident(w1q), resident(b1),
            resident(w2q), resident(b2),
            resident(w3q), resident(b3),
        ],
        out_specs=(
            pl.BlockSpec((n_a, tile), lambda i: (0, i)),
            pl.BlockSpec((1, tile), lambda i: (0, i)),
        ),
        compiler_params=pltpu.CompilerParams(
            dimension_semantics=("parallel",),   # megacore-shard batch on v7x
        ),
        cost_estimate=pl.CostEstimate(
            flops=flops, transcendentals=0, bytes_accessed=bytes_accessed
        ),
    )(state_q, w1q, b1, w2q, b2, w3q, b3)

    return qt_pad[:, :B].T, act_pad[0, :B]


def init_params(key, obs_dim, hidden, n_a):
    """Deterministic synthetic parameters (no checkpoint load)."""
    ks = jax.random.split(key, 6)
    scale1 = 1.0 / jnp.sqrt(obs_dim)
    scale2 = 1.0 / jnp.sqrt(hidden)
    w1 = jax.random.uniform(ks[0], (obs_dim, hidden), jnp.float32, -scale1, scale1)
    b1 = jax.random.uniform(ks[1], (1, hidden), jnp.float32, -scale1, scale1)
    w2 = jax.random.uniform(ks[2], (hidden, hidden), jnp.float32, -scale2, scale2)
    b2 = jax.random.uniform(ks[3], (1, hidden), jnp.float32, -scale2, scale2)
    w3 = jax.random.uniform(ks[4], (hidden, n_a), jnp.float32, -scale2, scale2)
    b3 = jax.random.uniform(ks[5], (1, n_a), jnp.float32, -scale2, scale2)
    return (w1, b1, w2, b2, w3, b3)


def _reference(state, params):
    """Mirrors the kernel's numerics: bf16 storage, f32 accumulation."""
    w1, b1, w2, b2, w3, b3 = params
    x = state.astype(jnp.bfloat16)
    w1q, w2q, w3q = (w.astype(jnp.bfloat16) for w in (w1, w2, w3))
    h1 = jnp.maximum(
        jnp.dot(x, w1q, preferred_element_type=jnp.float32) + b1, 0.0
    ).astype(jnp.bfloat16)
    h2 = jnp.maximum(
        jnp.dot(h1, w2q, preferred_element_type=jnp.float32) + b2, 0.0
    ).astype(jnp.bfloat16)
    return jnp.dot(h2, w3q, preferred_element_type=jnp.float32) + b3


if __name__ == "__main__":
    B, obs_dim, hidden, n_a = 2, 16, 32, 4

    key = jax.random.PRNGKey(0)
    k_state, k_params = jax.random.split(key)
    state = jax.random.normal(k_state, (B, obs_dim), jnp.float32)
    params = init_params(k_params, obs_dim, hidden, n_a)

    q, actions = qnetwork_forward(state, params)
    q = jax.block_until_ready(q)
    actions = jax.block_until_ready(actions)

    q_ref = _reference(state, params)
    act_ref = jnp.argmax(q_ref, axis=-1).astype(jnp.int32)

    assert q.shape == (B, n_a)
    assert actions.shape == (B,)
    assert jnp.allclose(q, q_ref, atol=1e-4, rtol=1e-4), "Q mismatch vs reference"
    assert jnp.array_equal(actions, act_ref), "greedy action mismatch vs reference"

    print("KERNEL_OK")
</pallas_src>

<mosaic_0001>
module attributes {stable_mosaic.version = 11 : i64} {
  func.func @_qnet_kernel(%arg0: i32, %arg1: memref<8x16xbf16, #tpu.memory_space<vmem>>, %arg2: memref<16x32xbf16, #tpu.memory_space<vmem>>, %arg3: memref<1x32xf32, #tpu.memory_space<vmem>>, %arg4: memref<32x32xbf16, #tpu.memory_space<vmem>>, %arg5: memref<1x32xf32, #tpu.memory_space<vmem>>, %arg6: memref<32x4xbf16, #tpu.memory_space<vmem>>, %arg7: memref<1x4xf32, #tpu.memory_space<vmem>>, %arg8: memref<4x8xf32, #tpu.memory_space<vmem>>, %arg9: memref<1x8xi32, #tpu.memory_space<vmem>>) attributes {dimension_semantics = [#tpu.dimension_semantics<parallel>], iteration_bounds = array<i64: 1>, scalar_prefetch = 0 : i64, scratch_operands = 0 : i64, tpu.core_type = #tpu.core_type<tc>, window_params = [{transform_indices = @transform_0, window_bounds = array<i64: 8, 16>}, {pipeline_mode = #tpu.pipeline_mode<synchronous>, transform_indices = @transform_1, window_bounds = array<i64: 16, 32>}, {pipeline_mode = #tpu.pipeline_mode<synchronous>, transform_indices = @transform_2, window_bounds = array<i64: 1, 32>}, {pipeline_mode = #tpu.pipeline_mode<synchronous>, transform_indices = @transform_3, window_bounds = array<i64: 32, 32>}, {pipeline_mode = #tpu.pipeline_mode<synchronous>, transform_indices = @transform_4, window_bounds = array<i64: 1, 32>}, {pipeline_mode = #tpu.pipeline_mode<synchronous>, transform_indices = @transform_5, window_bounds = array<i64: 32, 4>}, {pipeline_mode = #tpu.pipeline_mode<synchronous>, transform_indices = @transform_6, window_bounds = array<i64: 1, 4>}, {transform_indices = @transform_7, window_bounds = array<i64: 4, 8>}, {transform_indices = @transform_8, window_bounds = array<i64: 1, 8>}]} {
    %c0 = arith.constant 0 : index
    %c0_0 = arith.constant 0 : index
    %0 = vector.load %arg1[%c0, %c0_0] : memref<8x16xbf16, #tpu.memory_space<vmem>>, vector<8x16xbf16>
    %c0_1 = arith.constant 0 : index
    %c0_2 = arith.constant 0 : index
    %1 = vector.load %arg2[%c0_1, %c0_2] : memref<16x32xbf16, #tpu.memory_space<vmem>>, vector<16x32xbf16>
    %cst = arith.constant dense<0.000000e+00> : vector<8x32xf32>
    %2 = tpu.matmul %0, %1, %cst {dimension_numbers = #tpu.dot_dimension_numbers<[1], [0], [0], [1], [0, 0, 1, 1], [], []>} : vector<8x16xbf16>, vector<16x32xbf16>, vector<8x32xf32> -> vector<8x32xf32>
    %c0_3 = arith.constant 0 : index
    %c0_4 = arith.constant 0 : index
    %3 = vector.load %arg3[%c0_3, %c0_4] : memref<1x32xf32, #tpu.memory_space<vmem>>, vector<1x32xf32>
    %4 = vector.broadcast %3 : vector<1x32xf32> to vector<8x32xf32>
    %5 = arith.addf %2, %4 : vector<8x32xf32>
    %cst_5 = arith.constant 0.000000e+00 : f32
    %6 = vector.broadcast %cst_5 : f32 to vector<8x32xf32>
    %7 = arith.maximumf %5, %6 : vector<8x32xf32>
    %8 = arith.truncf %7 : vector<8x32xf32> to vector<8x32xbf16>
    %c0_6 = arith.constant 0 : index
    %c0_7 = arith.constant 0 : index
    %9 = vector.load %arg4[%c0_6, %c0_7] : memref<32x32xbf16, #tpu.memory_space<vmem>>, vector<32x32xbf16>
    %cst_8 = arith.constant dense<0.000000e+00> : vector<8x32xf32>
    %10 = tpu.matmul %8, %9, %cst_8 {dimension_numbers = #tpu.dot_dimension_numbers<[1], [0], [0], [1], [0, 0, 1, 1], [], []>} : vector<8x32xbf16>, vector<32x32xbf16>, vector<8x32xf32> -> vector<8x32xf32>
    %c0_9 = arith.constant 0 : index
    %c0_10 = arith.constant 0 : index
    %11 = vector.load %arg5[%c0_9, %c0_10] : memref<1x32xf32, #tpu.memory_space<vmem>>, vector<1x32xf32>
    %12 = vector.broadcast %11 : vector<1x32xf32> to vector<8x32xf32>
    %13 = arith.addf %10, %12 : vector<8x32xf32>
    %cst_11 = arith.constant 0.000000e+00 : f32
    %14 = vector.broadcast %cst_11 : f32 to vector<8x32xf32>
    %15 = arith.maximumf %13, %14 : vector<8x32xf32>
    %16 = arith.truncf %15 : vector<8x32xf32> to vector<8x32xbf16>
    %c0_12 = arith.constant 0 : index
    %c0_13 = arith.constant 0 : index
    %17 = vector.load %arg6[%c0_12, %c0_13] : memref<32x4xbf16, #tpu.memory_space<vmem>>, vector<32x4xbf16>
    %cst_14 = arith.constant dense<0.000000e+00> : vector<8x4xf32>
    %18 = tpu.matmul %16, %17, %cst_14 {dimension_numbers = #tpu.dot_dimension_numbers<[1], [0], [0], [1], [0, 0, 1, 1], [], []>} : vector<8x32xbf16>, vector<32x4xbf16>, vector<8x4xf32> -> vector<8x4xf32>
    %c0_15 = arith.constant 0 : index
    %c0_16 = arith.constant 0 : index
    %19 = vector.load %arg7[%c0_15, %c0_16] : memref<1x4xf32, #tpu.memory_space<vmem>>, vector<1x4xf32>
    %20 = vector.broadcast %19 : vector<1x4xf32> to vector<8x4xf32>
    %21 = arith.addf %18, %20 : vector<8x4xf32>
    %22 = tpu.transpose %21, [1, 0] : vector<8x4xf32> -> vector<4x8xf32>
    %c0_17 = arith.constant 0 : index
    %c0_18 = arith.constant 0 : index
    %23 = vector.load %arg8[%c0_17, %c0_18] : memref<4x8xf32, #tpu.memory_space<vmem>>, vector<4x8xf32>
    tpu.vector_store %arg8[%c0_17, %c0_18], %22 {strides = array<i32>} : memref<4x8xf32, #tpu.memory_space<vmem>>, vector<4x8xf32>,
    %cst_19 = arith.constant dense<0xFF800000> : vector<8xf32>
    %24 = vector.multi_reduction <maximumf>, %22, %cst_19 [0] : vector<4x8xf32> to vector<8xf32>
    %25 = vector.shape_cast %24 : vector<8xf32> to vector<1x8xf32>
    %26 = tpu.iota {dimensions = array<i32: 0>} : vector<4x8xi32>
    %27 = vector.broadcast %25 : vector<1x8xf32> to vector<4x8xf32>
    %28 = arith.cmpf oeq, %22, %27 : vector<4x8xf32>
    %c2147483647_i32 = arith.constant 2147483647 : i32
    %29 = vector.broadcast %c2147483647_i32 : i32 to vector<4x8xi32>
    %30 = arith.select %28, %26, %29 : vector<4x8xi1>, vector<4x8xi32>
    %cst_20 = arith.constant dense<2147483647> : vector<8xi32>
    %31 = vector.multi_reduction <minsi>, %30, %cst_20 [0] : vector<4x8xi32> to vector<8xi32>
    %32 = vector.shape_cast %31 : vector<8xi32> to vector<1x8xi32>
    %c0_21 = arith.constant 0 : index
    %c0_22 = arith.constant 0 : index
    %33 = vector.load %arg9[%c0_21, %c0_22] : memref<1x8xi32, #tpu.memory_space<vmem>>, vector<1x8xi32>
    tpu.vector_store %arg9[%c0_21, %c0_22], %32 {strides = array<i32>} : memref<1x8xi32, #tpu.memory_space<vmem>>, vector<1x8xi32>,
    return
  }
  func.func @transform_0(%arg0: i32) -> (i32, i32) {
    %c0_i32 = arith.constant 0 : i32
    %c0_i32_0 = arith.constant 0 : i32
    return %arg0, %c0_i32 : i32, i32
  }
  func.func @transform_1(%arg0: i32) -> (i32, i32) {
    %c0_i32 = arith.constant 0 : i32
    %c0_i32_0 = arith.constant 0 : i32
    %c0_i32_1 = arith.constant 0 : i32
    return %c0_i32, %c0_i32_0 : i32, i32
  }
  func.func @transform_2(%arg0: i32) -> (i32, i32) {
    %c0_i32 = arith.constant 0 : i32
    %c0_i32_0 = arith.constant 0 : i32
    %c0_i32_1 = arith.constant 0 : i32
    return %c0_i32, %c0_i32_0 : i32, i32
  }
  func.func @transform_3(%arg0: i32) -> (i32, i32) {
    %c0_i32 = arith.constant 0 : i32
    %c0_i32_0 = arith.constant 0 : i32
    %c0_i32_1 = arith.constant 0 : i32
    return %c0_i32, %c0_i32_0 : i32, i32
  }
  func.func @transform_4(%arg0: i32) -> (i32, i32) {
    %c0_i32 = arith.constant 0 : i32
    %c0_i32_0 = arith.constant 0 : i32
    %c0_i32_1 = arith.constant 0 : i32
    return %c0_i32, %c0_i32_0 : i32, i32
  }
  func.func @transform_5(%arg0: i32) -> (i32, i32) {
    %c0_i32 = arith.constant 0 : i32
    %c0_i32_0 = arith.constant 0 : i32
    %c0_i32_1 = arith.constant 0 : i32
    return %c0_i32, %c0_i32_0 : i32, i32
  }
  func.func @transform_6(%arg0: i32) -> (i32, i32) {
    %c0_i32 = arith.constant 0 : i32
    %c0_i32_0 = arith.constant 0 : i32
    %c0_i32_1 = arith.constant 0 : i32
    return %c0_i32, %c0_i32_0 : i32, i32
  }
  func.func @transform_7(%arg0: i32) -> (i32, i32) {
    %c0_i32 = arith.constant 0 : i32
    %c0_i32_0 = arith.constant 0 : i32
    return %c0_i32, %arg0 : i32, i32
  }
  func.func @transform_8(%arg0: i32) -> (i32, i32) {
    %c0_i32 = arith.constant 0 : i32
    %c0_i32_0 = arith.constant 0 : i32
    return %c0_i32, %arg0 : i32, i32
  }
}

</mosaic_0001>

<bundles_post_ra>
// kernel: tpu_custom_call.1
= control target key start
LH: loop header
LB: loop body
LE: loop exit
PB: predicated region body
PF: predicated region fallthrough
CT: control target
= control target key end

     0   :  { %14 = vsyncpa [#allocation3], 0  ;;  %v411_v1 = vmov 0.0   ;;  %vm47_vm0 = vcmask 130048   ;;  %vm412_vm1 = vmmov 0   ;;  %s514_s0 = inlined_call_operand.vmem [shape: bf16[8,16], index: 0, kind: input, shape index: {}]   ;;  %s515_s1 = inlined_call_operand.vmem [shape: bf16[16,32], index: 1, kind: input, shape index: {}]   ;;  %s516_s2 = inlined_call_operand.vmem [shape: f32[1,32], index: 2, kind: input, shape index: {}]   ;;  %s517_s3 = inlined_call_operand.vmem [shape: bf16[32,32], index: 3, kind: input, shape index: {}]   ;;  %s518_s4 = inlined_call_operand.vmem [shape: f32[1,32], index: 4, kind: input, shape index: {}]   ;;  %s519_s5 = inlined_call_operand.vmem [shape: bf16[32,4], index: 5, kind: input, shape index: {}]   ;;  %s520_s6 = inlined_call_operand.vmem [shape: f32[1,4], index: 6, kind: input, shape index: {}]   ;;  %s521_s7 = inlined_call_operand.hbm [shape: f32[4,8], index: 7, kind: output, shape index: {0}]   ;;  %s522_s8 = inlined_call_operand.hbm [shape: s32[1,8], index: 8, kind: output, shape index: {1}]  }
   0x1   :  { %v358_v0 = vld [vmem:[%s515_s1] sm:$0xff]   ;;  %332 = vmatprep.subr.bf16.mxu0 %v411_v1  ;;  %338 = vmatprep.subr.bf16.mxu1 %v411_v1 }
   0x2   :  { %v31_v2 = vld [vmem:[%s514_s0] sm:$0xf]  ;;  %333 = vmatpush3.bf16.msra.mxu0 %v358_v0  ;;  %334 = vmatprep.mubr.msk.bf16.mxu0 %vm412_vm1, %v411_v1 }
   0x3   :  { %342 = vmatprep.mubr.msk.bf16.mxu1 %vm412_vm1, %v411_v1  ;;  %346 = vmatprep.subr.bf16.mxu0 %v411_v1 }
   0x4   :  { %15 = vsyncpa [#allocation5], 0  ;;  %v359_v3 = vld [vmem:[%s517_s3] sm:$0xff]   ;;  %v360_v4 = vld [vmem:[%s517_s3 + $0x8] sm:$0xff]   ;;  %vm116_vm2 = vcmask 261120   ;;  %vm260_vm3 = vcmask 60416  }
   0x5   :  { %335 = vmatmul.mubr.msk.bf16.vlgmr.msra.gmra.mrb[0].mxu0 %vm47_vm0, %v31_v2  ;;  %339 = vmatpush3.bf16.msra.mxu1 %v359_v3  ;;  %v361_v5 = vld [vmem:[%s519_s5] sm:$0xff]   ;;  %v362_v14 = vld [vmem:[%s519_s5 + $0x8] sm:$0xff]   ;;  %s413_s5 = smov [#allocation2]  }
   0x6   :  { %350 = vmatprep.mubr.msk.bf16.mxu0 %vm412_vm1, %v411_v1  ;;  %340 = vmatprep.subr.bf16.mxu1 %v411_v1  ;;  %v313_v6 = vld [vmem:[%s516_s2] ss:$0 sm:$0xff] }
   0x7   :  { %347 = vmatpush3.bf16.msra.mxu0 %v361_v5  ;;  %v316_v15 = vld [vmem:[%s518_s4] ss:$0 sm:$0xff]  ;;  %s291_s4 = sshll.u32 %s413_s5, 4  ;;  %s292_s4 = int_to_ptr.vmem [resolvable:$true] %s291_s4 }
   0x8   :  { %348 = vmatprep.subr.bf16.mxu0 %v411_v1  ;;  %v320_v23 = vld [vmem:[%s520_s6] ss:$0 sm:$0xff]  ;;  %s363_s19 = scalar_lea.vmem %s292_s4, 64  ;;  %p368_p1 = scmp.lt.s32.totalorder %s292_s4, %s292_s4 }
   0x9   :  { %341 = vmatpush3.bf16.msra.mxu1 %v360_v4  ;;  %p364_p0 = scmp.ne.s32.totalorder %s292_s4, %s363_s19  ;;  %p369_p2 = scmp.lt.s32.totalorder %s363_s19, %s363_s19 }
   0xb   :  { %349 = vmatpush3.bf16.msra.mxu0 %v362_v14  ;;  %p370_p3 = por %p369_p2, %p368_p1 }
   0xd   :  { %p371_p4 = pnand %p370_p3, %p364_p0 }
  0xd8   :  { %v85_v7 = vpop.f32.mrb[0].mxu0 }
  0xd9   :  { %v86_v8 = vadd.f32 %v313_v6, %v85_v7  ;;  %v336_v9 = vpop.f32.mrb[1].mxu0 }
  0xda   :  { %v88_v10 = vpop.f32.mrb[2].mxu0 }
  0xdb   :  { %v91_v11 = vmax.f32 %v86_v8, 0.0  ;;  %v337_v12 = vpop.f32.mrb[3].mxu0 }
  0xdd   :  { %v92_v13 = vpack.c.bf16 %v91_v11, %v91_v11 }
  0xdf   :  { %343 = vmatmul.mubr.msk.bf16.vlgmr.msra.gmra.mrb[0].mxu1 %vm116_vm2, %v92_v13 }
 0x1b2   :  { %v154_v16 = vpop.f32.mrb[0].mxu1 }
 0x1b3   :  { %v155_v17 = vadd.f32 %v316_v15, %v154_v16  ;;  %v344_v18 = vpop.f32.mrb[1].mxu1 }
 0x1b4   :  { %v157_v19 = vpop.f32.mrb[2].mxu1 }
 0x1b5   :  { %v160_v20 = vmax.f32 %v155_v17, 0.0  ;;  %v345_v21 = vpop.f32.mrb[3].mxu1 }
 0x1b7   :  { %v161_v22 = vpack.c.bf16 %v160_v20, %v160_v20 }
 0x1b9   :  { %351 = vmatmul.mubr.msk.bf16.vlgmr.msra.gmra.mrb[4].mxu0 %vm116_vm2, %v161_v22 }
 0x28c   :  { %v222_v24 = vpop.f32.mrb[4].mxu0 }
 0x28d   :  { %v352_v25 = vpop.f32.mrb[5].mxu0  ;;  %v223_v26 = vadd.f32 %v320_v23, %v222_v24 }
 0x28e   :  { %v225_v27 = vpop.f32.mrb[6].mxu0 }
 0x28f   :  { %228 = vxpose.xlu0.b32.start.end [1/1] (short) (narrow) %v223_v26, 8  ;;  %v353_v28 = vpop.f32.mrb[7].mxu0 }
 0x30f   :  { %v244_v29 = vpop.trf.xlu0 }
 0x310   :  { %v262_v30 = vsel %vm260_vm3, %v244_v29, -inf  ;;  %261 = vst.msk [vmem:[#allocation2] sm:$0xf] %vm260_vm3, %v244_v29 }
 0x311   :  { %v263_v31 = vrot.slane %v262_v30, 4 }
 0x312   :  { %374 = shalt.err (!%p371_p4)
}
 0x313   :  { %s375_s21 = scalar_lea.hbm %s521_s7, 64 }
 0x314   :  { %p376_p5 = scmp.ne.s32.totalorder %s521_s7, %s375_s21  ;;  %p379_p6 = scmp.lt.u32.totalorder %s375_s21, %s521_s7 }
 0x316   :  { %p381_p7 = pnand %p379_p6, %p376_p5 }
 0x318   :  { %384 = shalt.err (!%p381_p7)
}
 0x319   :  { %294 = dma.vmem_to_hbm [thread:$0]  %s292_s4, 64, %s521_s7, [#allocation3]   ;;  %v264_v32 = vmax.f32 %v262_v30, %v263_v31  ;;  %v269_v34 = vlaneseq  ;;  %vm283_vm7 = vcmask 57344  }
 0x31a   :  { %s414_s28 = smov [#allocation4]  }
 0x31b   :  { %v265_v33 = vrot.slane %v264_v32, 2  ;;  %v270_v37 = vshrl.u32 %v269_v34, 7  ;;  %s301_s29 = sshll.u32 %s414_s28, 4  ;;  %s302_s29 = int_to_ptr.vmem [resolvable:$true] %s301_s29 }
 0x31c   :  { %s385_s7 = scalar_lea.vmem %s302_s29, 16  ;;  %s389_s30 = scalar_lea.vmem %s302_s29, 32 }
 0x31d   :  { %v266_v35 = vmax.f32 %v264_v32, %v265_v33  ;;  %p386_p8 = scmp.ne.s32.totalorder %s302_s29, %s385_s7  ;;  %p390_p9 = scmp.lt.s32.totalorder %s302_s29, %s302_s29 }
 0x31e   :  { %p391_p10 = scmp.lt.s32.totalorder %s389_s30, %s385_s7 }
 0x31f   :  { %v267_v36 = vrot.slane %v266_v35, 1 }
 0x320   :  { %p392_p11 = por %p391_p10, %p390_p9 }
 0x321   :  { %v268_v38 = vmax.f32 %v266_v35, %v267_v36 }
 0x322   :  { %p393_p12 = pnand %p392_p11, %p386_p8 }
 0x323   :  { %vm271_vm4 = vcmp.eq.f32.partialorder %v244_v29, %v268_v38 }
 0x324   :  { %v272_v39 = vsel %vm271_vm4, %v270_v37, 2147483647 }
 0x325   :  { %v273_v40 = vsel %vm260_vm3, %v272_v39, 2147483647 }
 0x326   :  { %v274_v41 = vrot.slane %v273_v40, 4 }
 0x328   :  { %vm275_vm5 = vcmp.lt.s32.totalorder %v273_v40, %v274_v41 }
 0x329   :  { %v276_v42 = vsel %vm275_vm5, %v273_v40, %v274_v41 }
 0x32a   :  { %v277_v43 = vrot.slane %v276_v42, 2 }
 0x32c   :  { %vm278_vm6 = vcmp.lt.s32.totalorder %v276_v42, %v277_v43 }
 0x32d   :  { %v279_v44 = vsel %vm278_vm6, %v276_v42, %v277_v43 }
 0x32e   :  { %v280_v45 = vrot.slane %v279_v44, 1 }
 0x330   :  { %vm281_vm8 = vcmp.lt.s32.totalorder %v279_v44, %v280_v45 }
 0x331   :  { %v282_v46 = vsel %vm281_vm8, %v279_v44, %v280_v45 }
 0x332   :  { %284 = vst.msk [vmem:[#allocation4] sm:$0x1] %vm283_vm7, %v282_v46 }
 0x333   :  { %396 = shalt.err (!%p393_p12)
}
 0x334   :  { %s397_s1 = scalar_lea.hbm %s522_s8, 16 }
 0x335   :  { %p398_p13 = scmp.ne.s32.totalorder %s522_s8, %s397_s1  ;;  %p401_p0 = scmp.lt.u32.totalorder %s397_s1, %s522_s8 }
 0x337   :  { %p403_p1 = pnand %p401_p0, %p398_p13 }
 0x339   :  { %406 = shalt.err (!%p403_p1)
}
 0x33a   :  { %304 = dma.vmem_to_hbm [thread:$0]  %s302_s29, 16, %s522_s8, [#allocation5]  }
 0x33b   :  { %407 = dma.done.wait [#allocation3], 64  }
 0x33c   :  { %408 = vsyncadd [#allocation3], 4294967232 }
 0x33d   :  { %409 = dma.done.wait [#allocation5], 16  }
 0x33e   :  { %410 = vsyncadd [#allocation5], 4294967280 }
 0x33f   :  { %311 = vsyncpa [#allocation3], 1 }
 0x340   :  { %312 = vsyncpa [#allocation5], 1 }

</bundles_post_ra>
